<compile_context>
chip_gen: v5e
topology: v5e:2x2
jax: 0.10.0
libtpu: 0.0.40
codegen_flags: <defaults>
</compile_context>

<pallas_src>
import jax
import jax.numpy as jnp
from jax.experimental import pallas as pl
from jax.experimental.pallas import tpu as pltpu


def addmm_cat_kernel(x1_ref, x5_ref, x8_ref, o_ref):
    # MXU matmul with f32 accumulation, then broadcast-add the (1, N) bias.
    acc = jnp.dot(x5_ref[...], x8_ref[...], preferred_element_type=jnp.float32)
    o_ref[...] = (acc + x1_ref[...]).astype(o_ref.dtype)
    # torch.cat([v1], 1) with a single tensor is the identity: nothing to do.


def addmm_cat(x1, x5, x8):
    M, K = x5.shape
    K2, N = x8.shape
    assert K == K2
    assert x1.shape == (1, N)

    # Round M up to the 8-sublane boundary so loads/stores are unmasked.
    M_pad = ((M + 7) // 8) * 8
    x5_p = x5 if M_pad == M else jnp.pad(x5, ((0, M_pad - M), (0, 0)))

    vmem = pltpu.MemorySpace.VMEM
    out = pl.pallas_call(
        addmm_cat_kernel,
        out_shape=jax.ShapeDtypeStruct((M_pad, N), x5.dtype),
        # No grid: single invocation, whole arrays resident in VMEM.
        in_specs=[
            pl.BlockSpec(memory_space=vmem),  # x1 (1, N)
            pl.BlockSpec(memory_space=vmem),  # x5 (M_pad, K)
            pl.BlockSpec(memory_space=vmem),  # x8 (K, N)
        ],
        out_specs=pl.BlockSpec(memory_space=vmem),
    )(x1, x5_p, x8)

    # Drop the padded rows.
    return out[:M]


if __name__ == "__main__":
    # Shapes mirroring the module: x5=(14,256), x8=(256,256), bias x1=(1,256)
    # so it broadcasts over the 14 output rows.
    M, K, N = 14, 256, 256
    key = jax.random.PRNGKey(0)
    k1, k2, k3 = jax.random.split(key, 3)
    x1 = jax.random.normal(k1, (1, N), dtype=jnp.float32)
    x5 = jax.random.normal(k2, (M, K), dtype=jnp.float32)
    x8 = jax.random.normal(k3, (K, N), dtype=jnp.float32)

    out = addmm_cat(x1, x5, x8)
    out = jax.block_until_ready(out)

    # Reference check in plain JAX.
    ref = x1 + x5 @ x8
    assert out.shape == (M, N)
    assert jnp.allclose(out, ref, atol=1e-3, rtol=1e-3)

    print("KERNEL_OK")
</pallas_src>

<mosaic_0001>
module attributes {stable_mosaic.version = 11 : i64} {
  func.func @addmm_cat_kernel(%arg0: memref<1x256xf32, #tpu.memory_space<vmem>>, %arg1: memref<16x256xf32, #tpu.memory_space<vmem>>, %arg2: memref<256x256xf32, #tpu.memory_space<vmem>>, %arg3: memref<16x256xf32, #tpu.memory_space<vmem>>) attributes {dimension_semantics = [], scalar_prefetch = 0 : i64, scratch_operands = 0 : i64, tpu.core_type = #tpu.core_type<tc>} {
    %c0 = arith.constant 0 : index
    %c0_0 = arith.constant 0 : index
    %0 = vector.load %arg1[%c0, %c0_0] : memref<16x256xf32, #tpu.memory_space<vmem>>, vector<16x256xf32>
    %c0_1 = arith.constant 0 : index
    %c0_2 = arith.constant 0 : index
    %1 = vector.load %arg2[%c0_1, %c0_2] : memref<256x256xf32, #tpu.memory_space<vmem>>, vector<256x256xf32>
    %cst = arith.constant dense<0.000000e+00> : vector<16x256xf32>
    %2 = tpu.matmul %0, %1, %cst {dimension_numbers = #tpu.dot_dimension_numbers<[1], [0], [0], [1], [0, 0, 1, 1], [], []>} : vector<16x256xf32>, vector<256x256xf32>, vector<16x256xf32> -> vector<16x256xf32>
    %c0_3 = arith.constant 0 : index
    %c0_4 = arith.constant 0 : index
    %3 = vector.load %arg0[%c0_3, %c0_4] : memref<1x256xf32, #tpu.memory_space<vmem>>, vector<1x256xf32>
    %4 = vector.broadcast %3 : vector<1x256xf32> to vector<16x256xf32>
    %5 = arith.addf %2, %4 : vector<16x256xf32>
    %c0_5 = arith.constant 0 : index
    %c0_6 = arith.constant 0 : index
    %6 = vector.load %arg3[%c0_5, %c0_6] : memref<16x256xf32, #tpu.memory_space<vmem>>, vector<16x256xf32>
    tpu.vector_store %arg3[%c0_5, %c0_6], %5 {strides = array<i32>} : memref<16x256xf32, #tpu.memory_space<vmem>>, vector<16x256xf32>,
    return
  }
}

</mosaic_0001>

<bundles_post_ra>
// kernel: tpu_custom_call.1
= control target key start
LH: loop header
LB: loop body
LE: loop exit
PB: predicated region body
PF: predicated region fallthrough
CT: control target
= control target key end

     0   :  { %8 = vsyncpa [#allocation3], 0  ;;  %s405_s0 = inlined_call_operand.hbm [shape: f32[1,256], index: 0, kind: input, shape index: {}]   ;;  %s406_s1 = inlined_call_operand.hbm [shape: f32[16,256], index: 1, kind: input, shape index: {}]   ;;  %s407_s2 = inlined_call_operand.hbm [shape: f32[256,256], index: 2, kind: input, shape index: {}]   ;;  %s408_s3 = inlined_call_operand.hbm [shape: f32[16,256], index: 3, kind: output, shape index: {}]  }
   0x1   :  { %9 = vsyncpa [#allocation6], 0  ;;  %s26_s14 = sshll.u32 %s406_s1, 4  ;;  %s27_s14 = int_to_ptr.hbm [resolvable:$true] %s26_s14 }
   0x2   :  { %10 = vsyncpa [#allocation4], 0  ;;  %s358_s15 = smov [#allocation5]   ;;  %s16_s19 = sshll.u32 %s405_s0, 4  ;;  %s17_s19 = int_to_ptr.hbm [resolvable:$true] %s16_s19 }
   0x3   :  { %s28_s16 = sshll.u32 %s358_s15, 4  ;;  %s359_s20 = smov 256   ;;  %s29_s16 = int_to_ptr.vmem [resolvable:$true] %s28_s16 }
   0x4   :  { %s360_s21 = smov 16   ;;  %s361_s22 = smov [#allocation2]  }
   0x5   :  { %34 = dma.hbm_to_vmem [thread:$0]  %s27_s14, 512, %s29_s16, [#allocation6], %s359_s20, %s359_s20, %s360_s21  }
   0x6   :  { %s18_s23 = sshll.u32 %s361_s22, 4  ;;  %s39_s25 = sshll.u32 %s407_s2, 4  ;;  %s19_s23 = int_to_ptr.vmem [resolvable:$true] %s18_s23  ;;  %s40_s25 = int_to_ptr.hbm [resolvable:$true] %s39_s25 }
   0x7   :  { %21 = dma.hbm_to_vmem [thread:$0]  %s17_s19, 32, %s19_s23, [#allocation3]  }
   0x8   :  { %s362_s26 = smov [#allocation7]  }
   0x9   :  { %s41_s27 = sshll.u32 %s362_s26, 4  ;;  %s42_s27 = int_to_ptr.vmem [resolvable:$true] %s41_s27 }
   0xa   :  { %47 = dma.hbm_to_vmem [thread:$0]  %s40_s25, 8192, %s42_s27, [#allocation6], %s359_s20, %s359_s20, %s360_s21  }
   0xb   :  { %352 = dma.done.wait [#allocation3], 32  }
   0xc   :  { %353 = vsyncadd [#allocation3], 4294967264 }
   0xd   :  { %354 = dma.done.wait [#allocation6], 8704  }
   0xe   :  { %355 = vsyncadd [#allocation6], 4294958592  ;;  %v95_v0 = vld [vmem:[#allocation7 + $0xf8] sm:$0xff]  ;;  %v93_v1 = vld [vmem:[#allocation7 + $0xe8] sm:$0xff]  ;;  %s363_s0 = smov [#allocation8]   ;;  %s236_s30 = sshll.u32 %s408_s3, 4  ;;  %s237_s30 = int_to_ptr.hbm [resolvable:$true] %s236_s30 }
   0xf   :  { %v127_v2 = vld [vmem:[#allocation7 + $0x1f8] sm:$0xff]  ;;  %180 = vmatpush.msra.mxu2 %v95_v0  ;;  %v125_v3 = vld [vmem:[#allocation7 + $0x1e8] sm:$0xff]  ;;  %v94_v4 = vld [vmem:[#allocation7 + $0xf0] sm:$0xff]  ;;  %s234_s2 = sshll.u32 %s363_s0, 4  ;;  %s235_s2 = int_to_ptr.vmem [resolvable:$true] %s234_s2 }
  0x10   :  { %203 = vmatpush.msra.mxu3 %v127_v2  ;;  %v91_v5 = vld [vmem:[#allocation7 + $0xd8] sm:$0xff]  ;;  %134 = vmatpush.msra.mxu0 %v94_v4  ;;  %v92_v7 = vld [vmem:[#allocation7 + $0xe0] sm:$0xff]  ;;  %v89_v8 = vld [vmem:[#allocation7 + $0xc8] sm:$0xff] }
  0x11   :  { %v123_v6 = vld [vmem:[#allocation7 + $0x1d8] sm:$0xff]  ;;  %181 = vmatpush.msra.mxu2 %v93_v1  ;;  %v126_v9 = vld [vmem:[#allocation7 + $0x1f0] sm:$0xff]  ;;  %v121_v10 = vld [vmem:[#allocation7 + $0x1c8] sm:$0xff] }
  0x12   :  { %204 = vmatpush.msra.mxu3 %v125_v3  ;;  %135 = vmatpush.msra.mxu0 %v92_v7  ;;  %v90_v11 = vld [vmem:[#allocation7 + $0xd0] sm:$0xff]  ;;  %v124_v12 = vld [vmem:[#allocation7 + $0x1e0] sm:$0xff]  ;;  %v87_v15 = vld [vmem:[#allocation7 + $0xb8] sm:$0xff] }
  0x13   :  { %157 = vmatpush.msra.mxu1 %v126_v9  ;;  %182 = vmatpush.msra.mxu2 %v91_v5  ;;  %v88_v13 = vld [vmem:[#allocation7 + $0xc0] sm:$0xff]  ;;  %v122_v14 = vld [vmem:[#allocation7 + $0x1d0] sm:$0xff]  ;;  %v119_v16 = vld [vmem:[#allocation7 + $0x1b8] sm:$0xff] }
  0x14   :  { %205 = vmatpush.msra.mxu3 %v123_v6  ;;  %136 = vmatpush.msra.mxu0 %v90_v11  ;;  %v86_v17 = vld [vmem:[#allocation7 + $0xb0] sm:$0xff]  ;;  %v120_v18 = vld [vmem:[#allocation7 + $0x1c0] sm:$0xff]  ;;  %v85_v19 = vld [vmem:[#allocation7 + $0xa8] sm:$0xff] }
  0x15   :  { %158 = vmatpush.msra.mxu1 %v124_v12  ;;  %183 = vmatpush.msra.mxu2 %v89_v8  ;;  %v117_v20 = vld [vmem:[#allocation7 + $0x1a8] sm:$0xff]  ;;  %v84_v21 = vld [vmem:[#allocation7 + $0xa0] sm:$0xff]  ;;  %v118_v22 = vld [vmem:[#allocation7 + $0x1b0] sm:$0xff] }
  0x16   :  { %206 = vmatpush.msra.mxu3 %v121_v10  ;;  %137 = vmatpush.msra.mxu0 %v88_v13  ;;  %v83_v23 = vld [vmem:[#allocation7 + $0x98] sm:$0xff]  ;;  %v82_v25 = vld [vmem:[#allocation7 + $0x90] sm:$0xff]  ;;  %v116_v26 = vld [vmem:[#allocation7 + $0x1a0] sm:$0xff] }
  0x17   :  { %159 = vmatpush.msra.mxu1 %v122_v14  ;;  %184 = vmatpush.msra.mxu2 %v87_v15  ;;  %v115_v24 = vld [vmem:[#allocation7 + $0x198] sm:$0xff]  ;;  %v81_v27 = vld [vmem:[#allocation7 + $0x88] sm:$0xff]  ;;  %v80_v29 = vld [vmem:[#allocation7 + $0x80] sm:$0xff] }
  0x18   :  { %207 = vmatpush.msra.mxu3 %v119_v16  ;;  %138 = vmatpush.msra.mxu0 %v86_v17  ;;  %v113_v28 = vld [vmem:[#allocation7 + $0x188] sm:$0xff]  ;;  %v114_v30 = vld [vmem:[#allocation7 + $0x190] sm:$0xff]  ;;  %v79_v31 = vld [vmem:[#allocation7 + $0x78] sm:$0xff] }
  0x19   :  { %160 = vmatpush.msra.mxu1 %v120_v18  ;;  %185 = vmatpush.msra.mxu2 %v85_v19  ;;  %v111_v32 = vld [vmem:[#allocation7 + $0x178] sm:$0xff]  ;;  %v78_v33 = vld [vmem:[#allocation7 + $0x70] sm:$0xff]  ;;  %v112_v34 = vld [vmem:[#allocation7 + $0x180] sm:$0xff] }
  0x1a   :  { %208 = vmatpush.msra.mxu3 %v117_v20  ;;  %139 = vmatpush.msra.mxu0 %v84_v21  ;;  %v77_v35 = vld [vmem:[#allocation7 + $0x68] sm:$0xff]  ;;  %v76_v37 = vld [vmem:[#allocation7 + $0x60] sm:$0xff]  ;;  %v110_v38 = vld [vmem:[#allocation7 + $0x170] sm:$0xff] }
  0x1b   :  { %161 = vmatpush.msra.mxu1 %v118_v22  ;;  %186 = vmatpush.msra.mxu2 %v83_v23  ;;  %v109_v36 = vld [vmem:[#allocation7 + $0x168] sm:$0xff]  ;;  %v75_v39 = vld [vmem:[#allocation7 + $0x58] sm:$0xff]  ;;  %v74_v41 = vld [vmem:[#allocation7 + $0x50] sm:$0xff] }
  0x1c   :  { %209 = vmatpush.msra.mxu3 %v115_v24  ;;  %140 = vmatpush.msra.mxu0 %v82_v25  ;;  %v107_v40 = vld [vmem:[#allocation7 + $0x158] sm:$0xff]  ;;  %v108_v42 = vld [vmem:[#allocation7 + $0x160] sm:$0xff]  ;;  %v73_v43 = vld [vmem:[#allocation7 + $0x48] sm:$0xff] }
  0x1d   :  { %162 = vmatpush.msra.mxu1 %v116_v26  ;;  %187 = vmatpush.msra.mxu2 %v81_v27  ;;  %v105_v44 = vld [vmem:[#allocation7 + $0x148] sm:$0xff]  ;;  %v72_v45 = vld [vmem:[#allocation7 + $0x40] sm:$0xff]  ;;  %v106_v46 = vld [vmem:[#allocation7 + $0x150] sm:$0xff] }
  0x1e   :  { %210 = vmatpush.msra.mxu3 %v113_v28  ;;  %141 = vmatpush.msra.mxu0 %v80_v29  ;;  %v71_v47 = vld [vmem:[#allocation7 + $0x38] sm:$0xff]  ;;  %v70_v49 = vld [vmem:[#allocation7 + $0x30] sm:$0xff]  ;;  %v104_v50 = vld [vmem:[#allocation7 + $0x140] sm:$0xff] }
  0x1f   :  { %163 = vmatpush.msra.mxu1 %v114_v30  ;;  %188 = vmatpush.msra.mxu2 %v79_v31  ;;  %v103_v48 = vld [vmem:[#allocation7 + $0x138] sm:$0xff]  ;;  %v69_v51 = vld [vmem:[#allocation7 + $0x28] sm:$0xff]  ;;  %v68_v53 = vld [vmem:[#allocation7 + $0x20] sm:$0xff] }
  0x20   :  { %211 = vmatpush.msra.mxu3 %v111_v32  ;;  %142 = vmatpush.msra.mxu0 %v78_v33  ;;  %v101_v52 = vld [vmem:[#allocation7 + $0x128] sm:$0xff]  ;;  %v102_v54 = vld [vmem:[#allocation7 + $0x130] sm:$0xff]  ;;  %v67_v55 = vld [vmem:[#allocation7 + $0x18] sm:$0xff] }
  0x21   :  { %164 = vmatpush.msra.mxu1 %v112_v34  ;;  %189 = vmatpush.msra.mxu2 %v77_v35  ;;  %v99_v56 = vld [vmem:[#allocation7 + $0x118] sm:$0xff]  ;;  %v66_v57 = vld [vmem:[#allocation7 + $0x10] sm:$0xff]  ;;  %v100_v58 = vld [vmem:[#allocation7 + $0x120] sm:$0xff] }
  0x22   :  { %212 = vmatpush.msra.mxu3 %v109_v36  ;;  %143 = vmatpush.msra.mxu0 %v76_v37  ;;  %v65_v59 = vld [vmem:[#allocation7 + $0x8] sm:$0xff]  ;;  %v60_v61 = vld [vmem:[#allocation5] sm:$0xff]  ;;  %v98_v0 = vld [vmem:[#allocation7 + $0x110] sm:$0xff] }
  0x23   :  { %165 = vmatpush.msra.mxu1 %v110_v38  ;;  %190 = vmatpush.msra.mxu2 %v75_v39  ;;  %v97_v60 = vld [vmem:[#allocation7 + $0x108] sm:$0xff]  ;;  %v64_v63 = vld [vmem:[#allocation7] sm:$0xff]  ;;  %v62_v2 = vld [vmem:[#allocation5 + $0x10] sm:$0xff] }
  0x24   :  { %213 = vmatpush.msra.mxu3 %v107_v40  ;;  %144 = vmatpush.msra.mxu0 %v74_v41  ;;  %v61_v62 = vld [vmem:[#allocation5 + $0x8] sm:$0xff]  ;;  %v96_v1 = vld [vmem:[#allocation7 + $0x100] sm:$0xff]  ;;  %v63_v3 = vld [vmem:[#allocation5 + $0x18] sm:$0xff] }
  0x25   :  { %166 = vmatpush.msra.mxu1 %v108_v42  ;;  %191 = vmatpush.msra.mxu2 %v73_v43  ;;  %v128_v4 = vld [vmem:[#allocation2] sm:$0x3] }
  0x26   :  { %214 = vmatpush.msra.mxu3 %v105_v44  ;;  %145 = vmatpush.msra.mxu0 %v72_v45  ;;  %v130_v5 = vperm.slane %v128_v4, 0  ;;  %v131_v8 = vperm.slane %v128_v4, 1 }
  0x27   :  { %167 = vmatpush.msra.mxu1 %v106_v46  ;;  %192 = vmatpush.msra.mxu2 %v71_v47 }
  0x28   :  { %215 = vmatpush.msra.mxu3 %v103_v48  ;;  %146 = vmatpush.msra.mxu0 %v70_v49 }
  0x29   :  { %168 = vmatpush.msra.mxu1 %v104_v50  ;;  %193 = vmatpush.msra.mxu2 %v69_v51 }
  0x2a   :  { %216 = vmatpush.msra.mxu3 %v101_v52  ;;  %147 = vmatpush.msra.mxu0 %v68_v53 }
  0x2b   :  { %169 = vmatpush.msra.mxu1 %v102_v54  ;;  %194 = vmatpush.msra.mxu2 %v67_v55 }
  0x2c   :  { %217 = vmatpush.msra.mxu3 %v99_v56  ;;  %148 = vmatpush.msra.mxu0 %v66_v57 }
  0x2d   :  { %170 = vmatpush.msra.mxu1 %v100_v58  ;;  %195 = vmatpush.msra.mxu2 %v65_v59 }
  0x2e   :  { %218 = vmatpush.msra.mxu3 %v97_v60  ;;  %196 = vmatmul.f32.vlgmr.msra.gmra.mxu2 %v60_v61 }
  0x2f   :  { %219 = vmatmul.f32.vlgmr.msra.gmra.mxu3 %v61_v62  ;;  %149 = vmatpush.msra.mxu0 %v64_v63 }
  0x30   :  { %171 = vmatpush.msra.mxu1 %v98_v0  ;;  %150 = vmatmul.f32.vlgmr.msra.gmra.mxu0 %v60_v61 }
  0x32   :  { %172 = vmatpush.msra.mxu1 %v96_v1 }
  0x33   :  { %173 = vmatmul.f32.vlgmr.msra.gmra.mxu1 %v61_v62 }
  0x36   :  { %199 = vmatmul.f32.gmra.mxu2 %v62_v2 }
  0x37   :  { %222 = vmatmul.f32.gmra.mxu3 %v63_v3 }
  0x38   :  { %153 = vmatmul.f32.gmra.mxu0 %v62_v2 }
  0x3b   :  { %176 = vmatmul.f32.gmra.mxu1 %v63_v3 }
  0xad   :  { %v151_v6 = vpop.f32.mrf.mxu0 }
  0xae   :  { %v152_v7 = vadd.f32 %v151_v6, %v130_v5 }
  0xb0   :  { %v174_v9 = vpop.f32.mrf.mxu1 }
  0xb1   :  { %v175_v10 = vadd.f32 %v174_v9, %v152_v7  ;;  %v197_v11 = vpop.f32.mrf.mxu2 }
  0xb2   :  { %v220_v12 = vpop.f32.mrf.mxu3  ;;  %v198_v13 = vadd.f32 %v197_v11, %v131_v8 }
  0xb3   :  { %226 = vst [vmem:[#allocation8] sm:$0xff] %v175_v10 }
  0xb4   :  { %v221_v14 = vadd.f32 %v220_v12, %v198_v13 }
  0xb5   :  { %v154_v15 = vpop.f32.mrf.mxu0 }
  0xb6   :  { %227 = vst [vmem:[#allocation8 + $0x8] sm:$0xff] %v221_v14  ;;  %v155_v16 = vadd.f32 %v154_v15, %v130_v5 }
  0xb8   :  { %v177_v17 = vpop.f32.mrf.mxu1 }
  0xb9   :  { %v178_v18 = vadd.f32 %v177_v17, %v155_v16  ;;  %v200_v19 = vpop.f32.mrf.mxu2 }
  0xba   :  { %v223_v20 = vpop.f32.mrf.mxu3  ;;  %v201_v21 = vadd.f32 %v200_v19, %v131_v8 }
  0xbb   :  { %228 = vst [vmem:[#allocation8 + $0x10] sm:$0xff] %v178_v18 }
  0xbc   :  { %v224_v22 = vadd.f32 %v223_v20, %v201_v21 }
  0xbe   :  { %229 = vst [vmem:[#allocation8 + $0x18] sm:$0xff] %v224_v22 }
  0xbf   :  { %242 = dma.vmem_to_hbm [thread:$0]  %s235_s2, 512, %s237_s30, [#allocation4], %s359_s20, %s359_s20, %s360_s21  }
  0xc0   :  { %356 = dma.done.wait [#allocation4], 512  }
  0xc1   :  { %357 = vsyncadd [#allocation4], 4294966784 }
  0xc2   :  { %247 = vsyncpa [#allocation3], 1 }
  0xc3   :  { %248 = vsyncpa [#allocation6], 1 }
  0xc4   :  { %249 = vsyncpa [#allocation4], 1 }

</bundles_post_ra>
